<compile_context>
chip_gen: v7x
topology: tpu7x:2x2x1
jax: 0.10.0
libtpu: 0.0.40
codegen_flags: <defaults>
</compile_context>

<pallas_src>
import math

import jax
import jax.numpy as jnp
from jax.experimental import pallas as pl
from jax.experimental.pallas import tpu as pltpu

# ---------------------------------------------------------------------------
# Small, module-consistent shapes
# ---------------------------------------------------------------------------
B = 2             # batch
L = 16            # sequence length
BL = B * L        # batch folded into the sublane axis
H = 32            # hidden size (stand-in for 768)
FF = 4 * H        # transformer FFN inner dim (=128, lane-dense)
F = 128           # num_filters (module default)
K = 3             # conv kernel_size (module default), padding=1
C = 3             # num classes
LANE = 128        # lane-dense logits width; wrapper slices [:, :C]
VOCAB = 50
VPAD = 128        # vocab rows padded to 128 for the one-hot embedding matmul

# slabA (lane width 128) row offsets: [w1 | convW0 | convW1 | convW2 | wfc]
A_W1, A_CW0, A_CW1, A_CW2, A_WFC = 0, H, 2 * H, 3 * H, 4 * H           # 0,32,64,96,128
A_ROWS = 4 * H + F                                                      # 256
# slabB (lane width H=32) row offsets:
#   [wqk | wvo | w2 | tok_emb(pad) | pos_emb(tiled) | mask_prev | mask_next]
B_WQK, B_WVO, B_W2 = 0, H, 2 * H                                        # 0,32,64
B_TOK = 2 * H + FF                                                      # 192
B_POS = B_TOK + VPAD                                                    # 320
B_MPREV = B_POS + BL                                                    # 352
B_MNEXT = B_MPREV + BL                                                  # 384
B_ROWS = B_MNEXT + BL                                                   # 416
# slabC (8, 128) rows: b1, bconv, bfc, b2, ln1_g, ln1_b, ln2_g, ln2_b


# ---------------------------------------------------------------------------
# Single fused kernel: embeddings + encoder layer + Conv1d/ReLU/MaxPool/Linear.
# No grid: one invocation, whole problem resident in VMEM (<0.3 MiB).
# ---------------------------------------------------------------------------
def fused_kernel(ids_ref, bias_ref, slabA_ref, slabB_ref, slabC_ref, out_ref):
    # ---- unpack packed parameter slabs (static, aligned row slices) --------
    w1   = slabA_ref[A_W1:A_W1 + H, :]           # (H, FF)
    cw0  = slabA_ref[A_CW0:A_CW0 + H, :]         # (H, F)  conv tap k=0
    cw1  = slabA_ref[A_CW1:A_CW1 + H, :]         # (H, F)  conv tap k=1
    cw2  = slabA_ref[A_CW2:A_CW2 + H, :]         # (H, F)  conv tap k=2
    wfc  = slabA_ref[A_WFC:A_WFC + F, :]         # (F, LANE)

    wqk  = slabB_ref[B_WQK:B_WQK + H, :]         # (H, H)  = wq @ wk.T / sqrt(H)
    wvo  = slabB_ref[B_WVO:B_WVO + H, :]         # (H, H)  = wv @ wo
    w2   = slabB_ref[B_W2:B_W2 + FF, :]          # (FF, H)
    tok  = slabB_ref[B_TOK:B_TOK + VPAD, :]      # (VPAD, H), rows >= VOCAB are zero
    pos  = slabB_ref[B_POS:B_POS + BL, :]        # (BL, H) position embeddings tiled over batch
    m_prev = slabB_ref[B_MPREV:B_MPREV + BL, :]  # (BL, H): 0 at sequence start, else 1
    m_next = slabB_ref[B_MNEXT:B_MNEXT + BL, :]  # (BL, H): 0 at sequence end,   else 1

    b1    = slabC_ref[0:1, :]                    # (1, FF)
    bconv = slabC_ref[1:2, :]                    # (1, F)
    bfc   = slabC_ref[2:3, :]                    # (1, LANE)
    b2    = slabC_ref[3:4, 0:H]                  # (1, H)
    g1    = slabC_ref[4:5, 0:H]
    be1   = slabC_ref[5:6, 0:H]
    g2    = slabC_ref[6:7, 0:H]
    be2   = slabC_ref[7:8, 0:H]

    # ---- embedding lookup as a one-hot matmul (no wrapper gather) ----------
    ids = ids_ref[...]                                               # (BL, 1) int32
    col = jax.lax.broadcasted_iota(jnp.int32, (BL, VPAD), 1)
    onehot = (col == ids).astype(jnp.float32)                        # (BL, VPAD)
    x = jnp.dot(onehot, tok, preferred_element_type=jnp.float32) + pos   # (BL, H)

    # ---- self-attention (projections folded, block-diag over folded batch) -
    qk = jnp.dot(x, wqk, preferred_element_type=jnp.float32)         # (BL, H)
    scores = jax.lax.dot_general(                                    # (BL, BL), no x.T materialized
        qk, x, (((1,), (1,)), ((), ())), preferred_element_type=jnp.float32)
    scores = scores + bias_ref[...]                                  # precomputed additive bias
    scores = scores - jnp.max(scores, axis=-1, keepdims=True)
    p = jnp.exp(scores)
    p = p * pl.reciprocal(jnp.sum(p, axis=-1, keepdims=True), approx=True)
    attn = jnp.dot(jnp.dot(p, x, preferred_element_type=jnp.float32), wvo,
                   preferred_element_type=jnp.float32)               # (BL, H)

    def layer_norm(y, g, b):
        mu = jnp.mean(y, axis=-1, keepdims=True)
        var = jnp.mean(y * y, axis=-1, keepdims=True) - mu * mu      # E[x^2] - mean^2
        return (y - mu) * jax.lax.rsqrt(var + 1e-5) * g + b

    h = layer_norm(x + attn, g1, be1)

    # ---- FFN (tanh-approx GELU) ---------------------------------------------
    # TODO(synk): HF roberta-base uses exact erf GELU; tanh approximation kept here.
    ff = jnp.dot(h, w1, preferred_element_type=jnp.float32) + b1     # (BL, FF)
    ff = 0.5 * ff * (1.0 + jnp.tanh(0.7978845608028654 * (ff + 0.044715 * ff * ff * ff)))
    ff = jnp.dot(ff, w2, preferred_element_type=jnp.float32) + b2    # (BL, H)
    hidden = layer_norm(h + ff, g2, be2)                             # (BL, H)

    # ---- Conv1d(kernel=3, padding=1) as 3 accumulated (H, F) matmuls --------
    prev = pltpu.roll(hidden, shift=1, axis=0) * m_prev              # x[t-1], zeroed at seq start
    nxt  = pltpu.roll(hidden, shift=BL - 1, axis=0) * m_next         # x[t+1], zeroed at seq end
    conv = (jnp.dot(prev,   cw0, preferred_element_type=jnp.float32)
            + jnp.dot(hidden, cw1, preferred_element_type=jnp.float32)
            + jnp.dot(nxt,    cw2, preferred_element_type=jnp.float32)
            + bconv)
    conv = jnp.maximum(conv, 0.0)                                    # ReLU, (BL, F)

    # AdaptiveMaxPool1d(1): one sublane reduce per batch element.
    pooled = jnp.max(conv.reshape(B, L, F), axis=1)                  # (B, F)

    # TODO(synk): Dropout(0.3) is identity in eval mode (no RNG applied).
    # Linear(F, 3) zero-padded to 128 lanes -> lane-dense (B, 128) store.
    out_ref[...] = jnp.dot(pooled, wfc, preferred_element_type=jnp.float32) + bfc


# ---------------------------------------------------------------------------
# Deterministic parameter construction (packed into 3 slabs) + forward
# ---------------------------------------------------------------------------
def init_params(seed=0):
    key = jax.random.PRNGKey(seed)
    ks = jax.random.split(key, 12)
    s = 0.02

    tok_emb = s * jax.random.normal(ks[0], (VOCAB, H), jnp.float32)
    pos_emb = s * jax.random.normal(ks[1], (L, H), jnp.float32)

    wq = s * jax.random.normal(ks[2], (H, H), jnp.float32)
    wk = s * jax.random.normal(ks[3], (H, H), jnp.float32)
    wv = s * jax.random.normal(ks[4], (H, H), jnp.float32)
    wo = s * jax.random.normal(ks[5], (H, H), jnp.float32)
    # Single-head, bias-free attention -> fold projections algebraically.
    wqk = (wq @ wk.T) / math.sqrt(H)      # scores   = (x @ wqk) @ x^T
    wvo = wv @ wo                         # attn_out = (softmax @ x) @ wvo

    w1 = s * jax.random.normal(ks[6], (H, FF), jnp.float32)
    w2 = s * jax.random.normal(ks[7], (FF, H), jnp.float32)
    b1 = jnp.zeros((FF,), jnp.float32)
    b2 = jnp.zeros((H,), jnp.float32)
    g1 = jnp.ones((H,), jnp.float32); be1 = jnp.zeros((H,), jnp.float32)
    g2 = jnp.ones((H,), jnp.float32); be2 = jnp.zeros((H,), jnp.float32)

    # Conv1d weight, PyTorch layout (F, H, K) -> three (H, F) tap slabs so the
    # kernel accumulates prev@W0 + cur@W1 + next@W2 (no lane-axis concat).
    conv_w_pt = s * jax.random.normal(ks[8], (F, H, K), jnp.float32)
    cw = [conv_w_pt[:, :, k].T for k in range(K)]                    # each (H, F)
    bconv = s * jax.random.normal(ks[9], (F,), jnp.float32)

    # Linear(F, 3), PyTorch layout (C, F) -> (F, 128) zero-padded (lane-dense).
    fc_w_pt = s * jax.random.normal(ks[10], (C, F), jnp.float32)
    fc_b_pt = s * jax.random.normal(ks[11], (C,), jnp.float32)
    wfc = jnp.zeros((F, LANE), jnp.float32).at[:, :C].set(fc_w_pt.T)
    bfc = jnp.zeros((LANE,), jnp.float32).at[:C].set(fc_b_pt)

    # Conv boundary masks (precomputed: zero x[t-1] at seq start / x[t+1] at end).
    posn = jnp.arange(BL) % L
    m_prev = jnp.where(posn == 0, 0.0, 1.0)[:, None] * jnp.ones((1, H), jnp.float32)
    m_next = jnp.where(posn == L - 1, 0.0, 1.0)[:, None] * jnp.ones((1, H), jnp.float32)

    tok_pad = jnp.zeros((VPAD, H), jnp.float32).at[:VOCAB, :].set(tok_emb)
    pos_tiled = jnp.tile(pos_emb, (B, 1))                            # (BL, H)

    # Pack everything into 3 slabs (few, larger DMAs instead of 18 tiny ones).
    slabA = jnp.concatenate([w1, cw[0], cw[1], cw[2], wfc], axis=0)  # (A_ROWS, 128)
    slabB = jnp.concatenate([wqk, wvo, w2, tok_pad, pos_tiled, m_prev, m_next],
                            axis=0)                                  # (B_ROWS, 32)

    def lane_pad(v):
        return jnp.zeros((LANE,), jnp.float32).at[:v.shape[0]].set(v)
    slabC = jnp.stack([lane_pad(b1), lane_pad(bconv), lane_pad(bfc), lane_pad(b2),
                       lane_pad(g1), lane_pad(be1), lane_pad(g2), lane_pad(be2)],
                      axis=0)                                        # (8, 128)

    assert slabA.shape == (A_ROWS, LANE) and slabB.shape == (B_ROWS, H)
    return dict(slabA=slabA, slabB=slabB, slabC=slabC)


@jax.jit
def forward(params, input_ids, attention_mask):
    ids = input_ids.reshape(BL, 1).astype(jnp.int32)
    # Additive attention bias: block-diagonal across the folded batch, -1e9 at
    # padded keys. Precomputed here (tiny) so the kernel just adds it.
    blk_q = jnp.arange(BL, dtype=jnp.int32)[:, None] // L
    blk_k = jnp.arange(BL, dtype=jnp.int32)[None, :] // L
    key_ok = attention_mask.reshape(1, BL) > 0
    bias = jnp.where((blk_q == blk_k) & key_ok, 0.0, -1e9).astype(jnp.float32)

    logits_pad = pl.pallas_call(
        fused_kernel,
        out_shape=jax.ShapeDtypeStruct((B, LANE), jnp.float32),
    )(ids, bias, params["slabA"], params["slabB"], params["slabC"])
    return logits_pad[:, :C]                                         # (B, 3)


if __name__ == "__main__":
    params = init_params(seed=0)

    key = jax.random.PRNGKey(0)
    input_ids = jax.random.randint(key, (B, L), 0, VOCAB, dtype=jnp.int32)
    attention_mask = jnp.ones((B, L), jnp.int32).at[1, 12:].set(0)   # second example padded

    logits = forward(params, input_ids, attention_mask)
    jax.block_until_ready(logits)
    assert logits.shape == (B, C) and logits.dtype == jnp.float32
    assert bool(jnp.all(jnp.isfinite(logits)))
    print("KERNEL_OK")
</pallas_src>

<mosaic_0001>
module attributes {stable_mosaic.version = 11 : i64} {
  func.func @fused_kernel(%arg0: memref<32x1xi32, #tpu.memory_space<vmem>>, %arg1: memref<32x32xf32, #tpu.memory_space<vmem>>, %arg2: memref<256x128xf32, #tpu.memory_space<vmem>>, %arg3: memref<416x32xf32, #tpu.memory_space<vmem>>, %arg4: memref<8x128xf32, #tpu.memory_space<vmem>>, %arg5: memref<2x128xf32, #tpu.memory_space<vmem>>) attributes {dimension_semantics = [], scalar_prefetch = 0 : i64, scratch_operands = 0 : i64, tpu.core_type = #tpu.core_type<tc>} {
    %c0 = arith.constant 0 : index
    %c0_0 = arith.constant 0 : index
    %0 = vector.load %arg2[%c0, %c0_0] : memref<256x128xf32, #tpu.memory_space<vmem>>, vector<32x128xf32>
    %c32 = arith.constant 32 : index
    %c0_1 = arith.constant 0 : index
    %1 = vector.load %arg2[%c32, %c0_1] : memref<256x128xf32, #tpu.memory_space<vmem>>, vector<32x128xf32>
    %c64 = arith.constant 64 : index
    %c0_2 = arith.constant 0 : index
    %2 = vector.load %arg2[%c64, %c0_2] : memref<256x128xf32, #tpu.memory_space<vmem>>, vector<32x128xf32>
    %c96 = arith.constant 96 : index
    %c0_3 = arith.constant 0 : index
    %3 = vector.load %arg2[%c96, %c0_3] : memref<256x128xf32, #tpu.memory_space<vmem>>, vector<32x128xf32>
    %c128 = arith.constant 128 : index
    %c0_4 = arith.constant 0 : index
    %4 = vector.load %arg2[%c128, %c0_4] : memref<256x128xf32, #tpu.memory_space<vmem>>, vector<128x128xf32>
    %c0_5 = arith.constant 0 : index
    %c0_6 = arith.constant 0 : index
    %5 = vector.load %arg3[%c0_5, %c0_6] : memref<416x32xf32, #tpu.memory_space<vmem>>, vector<32x32xf32>
    %c32_7 = arith.constant 32 : index
    %c0_8 = arith.constant 0 : index
    %6 = vector.load %arg3[%c32_7, %c0_8] : memref<416x32xf32, #tpu.memory_space<vmem>>, vector<32x32xf32>
    %c64_9 = arith.constant 64 : index
    %c0_10 = arith.constant 0 : index
    %7 = vector.load %arg3[%c64_9, %c0_10] : memref<416x32xf32, #tpu.memory_space<vmem>>, vector<128x32xf32>
    %c192 = arith.constant 192 : index
    %c0_11 = arith.constant 0 : index
    %8 = vector.load %arg3[%c192, %c0_11] : memref<416x32xf32, #tpu.memory_space<vmem>>, vector<128x32xf32>
    %c320 = arith.constant 320 : index
    %c0_12 = arith.constant 0 : index
    %9 = vector.load %arg3[%c320, %c0_12] : memref<416x32xf32, #tpu.memory_space<vmem>>, vector<32x32xf32>
    %c352 = arith.constant 352 : index
    %c0_13 = arith.constant 0 : index
    %10 = vector.load %arg3[%c352, %c0_13] : memref<416x32xf32, #tpu.memory_space<vmem>>, vector<32x32xf32>
    %c384 = arith.constant 384 : index
    %c0_14 = arith.constant 0 : index
    %11 = vector.load %arg3[%c384, %c0_14] : memref<416x32xf32, #tpu.memory_space<vmem>>, vector<32x32xf32>
    %c0_15 = arith.constant 0 : index
    %c0_16 = arith.constant 0 : index
    %12 = vector.load %arg4[%c0_15, %c0_16] : memref<8x128xf32, #tpu.memory_space<vmem>>, vector<1x128xf32>
    %c1 = arith.constant 1 : index
    %c0_17 = arith.constant 0 : index
    %13 = vector.load %arg4[%c1, %c0_17] : memref<8x128xf32, #tpu.memory_space<vmem>>, vector<1x128xf32>
    %c2 = arith.constant 2 : index
    %c0_18 = arith.constant 0 : index
    %14 = vector.load %arg4[%c2, %c0_18] : memref<8x128xf32, #tpu.memory_space<vmem>>, vector<1x128xf32>
    %c3 = arith.constant 3 : index
    %c0_19 = arith.constant 0 : index
    %15 = vector.load %arg4[%c3, %c0_19] : memref<8x128xf32, #tpu.memory_space<vmem>>, vector<1x32xf32>
    %c4 = arith.constant 4 : index
    %c0_20 = arith.constant 0 : index
    %16 = vector.load %arg4[%c4, %c0_20] : memref<8x128xf32, #tpu.memory_space<vmem>>, vector<1x32xf32>
    %c5 = arith.constant 5 : index
    %c0_21 = arith.constant 0 : index
    %17 = vector.load %arg4[%c5, %c0_21] : memref<8x128xf32, #tpu.memory_space<vmem>>, vector<1x32xf32>
    %c6 = arith.constant 6 : index
    %c0_22 = arith.constant 0 : index
    %18 = vector.load %arg4[%c6, %c0_22] : memref<8x128xf32, #tpu.memory_space<vmem>>, vector<1x32xf32>
    %c7 = arith.constant 7 : index
    %c0_23 = arith.constant 0 : index
    %19 = vector.load %arg4[%c7, %c0_23] : memref<8x128xf32, #tpu.memory_space<vmem>>, vector<1x32xf32>
    %c0_24 = arith.constant 0 : index
    %c0_25 = arith.constant 0 : index
    %20 = vector.load %arg0[%c0_24, %c0_25] : memref<32x1xi32, #tpu.memory_space<vmem>>, vector<32x1xi32>
    %21 = tpu.iota {dimensions = array<i32: 1>} : vector<32x128xi32>
    %22 = vector.broadcast %20 : vector<32x1xi32> to vector<32x128xi32>
    %23 = arith.cmpi eq, %21, %22 : vector<32x128xi32>
    %24 = arith.extui %23 : vector<32x128xi1> to vector<32x128xi32>
    %25 = arith.sitofp %24 : vector<32x128xi32> to vector<32x128xf32>
    %cst = arith.constant dense<0.000000e+00> : vector<32x32xf32>
    %26 = tpu.matmul %25, %8, %cst {dimension_numbers = #tpu.dot_dimension_numbers<[1], [0], [0], [1], [0, 0, 1, 1], [], []>} : vector<32x128xf32>, vector<128x32xf32>, vector<32x32xf32> -> vector<32x32xf32>
    %27 = arith.addf %26, %9 : vector<32x32xf32>
    %cst_26 = arith.constant dense<0.000000e+00> : vector<32x32xf32>
    %28 = tpu.matmul %27, %5, %cst_26 {dimension_numbers = #tpu.dot_dimension_numbers<[1], [0], [0], [1], [0, 0, 1, 1], [], []>} : vector<32x32xf32>, vector<32x32xf32>, vector<32x32xf32> -> vector<32x32xf32>
    %cst_27 = arith.constant dense<0.000000e+00> : vector<32x32xf32>
    %29 = tpu.matmul %28, %27, %cst_27 {dimension_numbers = #tpu.dot_dimension_numbers<[1], [1], [0], [0], [0, 0, 1, 0], [], []>} : vector<32x32xf32>, vector<32x32xf32>, vector<32x32xf32> -> vector<32x32xf32>
    %c0_28 = arith.constant 0 : index
    %c0_29 = arith.constant 0 : index
    %30 = vector.load %arg1[%c0_28, %c0_29] : memref<32x32xf32, #tpu.memory_space<vmem>>, vector<32x32xf32>
    %31 = arith.addf %29, %30 : vector<32x32xf32>
    %cst_30 = arith.constant dense<0xFF800000> : vector<32xf32>
    %32 = vector.multi_reduction <maximumf>, %31, %cst_30 [1] : vector<32x32xf32> to vector<32xf32>
    %33 = vector.shape_cast %32 : vector<32xf32> to vector<32x1xf32>
    %34 = vector.broadcast %33 : vector<32x1xf32> to vector<32x32xf32>
    %35 = arith.subf %31, %34 : vector<32x32xf32>
    %36 = math.exp %35 : vector<32x32xf32>
    %cst_31 = arith.constant dense<0.000000e+00> : vector<32xf32>
    %37 = vector.multi_reduction <add>, %36, %cst_31 [1] : vector<32x32xf32> to vector<32xf32>
    %38 = vector.shape_cast %37 : vector<32xf32> to vector<32x1xf32>
    %39 = tpu.reciprocal %38 {approx = true} : vector<32x1xf32> -> vector<32x1xf32>
    %40 = vector.broadcast %39 : vector<32x1xf32> to vector<32x32xf32>
    %41 = arith.mulf %36, %40 : vector<32x32xf32>
    %cst_32 = arith.constant dense<0.000000e+00> : vector<32x32xf32>
    %42 = tpu.matmul %41, %27, %cst_32 {dimension_numbers = #tpu.dot_dimension_numbers<[1], [0], [0], [1], [0, 0, 1, 1], [], []>} : vector<32x32xf32>, vector<32x32xf32>, vector<32x32xf32> -> vector<32x32xf32>
    %cst_33 = arith.constant dense<0.000000e+00> : vector<32x32xf32>
    %43 = tpu.matmul %42, %6, %cst_33 {dimension_numbers = #tpu.dot_dimension_numbers<[1], [0], [0], [1], [0, 0, 1, 1], [], []>} : vector<32x32xf32>, vector<32x32xf32>, vector<32x32xf32> -> vector<32x32xf32>
    %44 = arith.addf %27, %43 : vector<32x32xf32>
    %cst_34 = arith.constant dense<0.000000e+00> : vector<32xf32>
    %45 = vector.multi_reduction <add>, %44, %cst_34 [1] : vector<32x32xf32> to vector<32xf32>
    %46 = vector.shape_cast %45 : vector<32xf32> to vector<32x1xf32>
    %cst_35 = arith.constant 3.200000e+01 : f32
    %47 = vector.broadcast %cst_35 : f32 to vector<32x1xf32>
    %48 = arith.divf %46, %47 : vector<32x1xf32>
    %49 = arith.mulf %44, %44 : vector<32x32xf32>
    %cst_36 = arith.constant dense<0.000000e+00> : vector<32xf32>
    %50 = vector.multi_reduction <add>, %49, %cst_36 [1] : vector<32x32xf32> to vector<32xf32>
    %51 = vector.shape_cast %50 : vector<32xf32> to vector<32x1xf32>
    %cst_37 = arith.constant 3.200000e+01 : f32
    %52 = vector.broadcast %cst_37 : f32 to vector<32x1xf32>
    %53 = arith.divf %51, %52 : vector<32x1xf32>
    %54 = arith.mulf %48, %48 : vector<32x1xf32>
    %55 = arith.subf %53, %54 : vector<32x1xf32>
    %56 = vector.broadcast %48 : vector<32x1xf32> to vector<32x32xf32>
    %57 = arith.subf %44, %56 : vector<32x32xf32>
    %cst_38 = arith.constant 9.99999974E-6 : f32
    %58 = vector.broadcast %cst_38 : f32 to vector<32x1xf32>
    %59 = arith.addf %55, %58 : vector<32x1xf32>
    %60 = math.rsqrt %59 : vector<32x1xf32>
    %61 = vector.broadcast %60 : vector<32x1xf32> to vector<32x32xf32>
    %62 = arith.mulf %57, %61 : vector<32x32xf32>
    %63 = vector.broadcast %16 : vector<1x32xf32> to vector<32x32xf32>
    %64 = arith.mulf %62, %63 : vector<32x32xf32>
    %65 = vector.broadcast %17 : vector<1x32xf32> to vector<32x32xf32>
    %66 = arith.addf %64, %65 : vector<32x32xf32>
    %cst_39 = arith.constant dense<0.000000e+00> : vector<32x128xf32>
    %67 = tpu.matmul %66, %0, %cst_39 {dimension_numbers = #tpu.dot_dimension_numbers<[1], [0], [0], [1], [0, 0, 1, 1], [], []>} : vector<32x32xf32>, vector<32x128xf32>, vector<32x128xf32> -> vector<32x128xf32>
    %68 = vector.broadcast %12 : vector<1x128xf32> to vector<32x128xf32>
    %69 = arith.addf %67, %68 : vector<32x128xf32>
    %cst_40 = arith.constant 5.000000e-01 : f32
    %70 = vector.broadcast %cst_40 : f32 to vector<32x128xf32>
    %71 = arith.mulf %70, %69 : vector<32x128xf32>
    %cst_41 = arith.constant 4.471500e-02 : f32
    %72 = vector.broadcast %cst_41 : f32 to vector<32x128xf32>
    %73 = arith.mulf %72, %69 : vector<32x128xf32>
    %74 = arith.mulf %73, %69 : vector<32x128xf32>
    %75 = arith.mulf %74, %69 : vector<32x128xf32>
    %76 = arith.addf %69, %75 : vector<32x128xf32>
    %cst_42 = arith.constant 0.797884583 : f32
    %77 = vector.broadcast %cst_42 : f32 to vector<32x128xf32>
    %78 = arith.mulf %77, %76 : vector<32x128xf32>
    %79 = math.tanh %78 : vector<32x128xf32>
    %cst_43 = arith.constant 1.000000e+00 : f32
    %80 = vector.broadcast %cst_43 : f32 to vector<32x128xf32>
    %81 = arith.addf %80, %79 : vector<32x128xf32>
    %82 = arith.mulf %71, %81 : vector<32x128xf32>
    %cst_44 = arith.constant dense<0.000000e+00> : vector<32x32xf32>
    %83 = tpu.matmul %82, %7, %cst_44 {dimension_numbers = #tpu.dot_dimension_numbers<[1], [0], [0], [1], [0, 0, 1, 1], [], []>} : vector<32x128xf32>, vector<128x32xf32>, vector<32x32xf32> -> vector<32x32xf32>
    %84 = vector.broadcast %15 : vector<1x32xf32> to vector<32x32xf32>
    %85 = arith.addf %83, %84 : vector<32x32xf32>
    %86 = arith.addf %66, %85 : vector<32x32xf32>
    %cst_45 = arith.constant dense<0.000000e+00> : vector<32xf32>
    %87 = vector.multi_reduction <add>, %86, %cst_45 [1] : vector<32x32xf32> to vector<32xf32>
    %88 = vector.shape_cast %87 : vector<32xf32> to vector<32x1xf32>
    %cst_46 = arith.constant 3.200000e+01 : f32
    %89 = vector.broadcast %cst_46 : f32 to vector<32x1xf32>
    %90 = arith.divf %88, %89 : vector<32x1xf32>
    %91 = arith.mulf %86, %86 : vector<32x32xf32>
    %cst_47 = arith.constant dense<0.000000e+00> : vector<32xf32>
    %92 = vector.multi_reduction <add>, %91, %cst_47 [1] : vector<32x32xf32> to vector<32xf32>
    %93 = vector.shape_cast %92 : vector<32xf32> to vector<32x1xf32>
    %cst_48 = arith.constant 3.200000e+01 : f32
    %94 = vector.broadcast %cst_48 : f32 to vector<32x1xf32>
    %95 = arith.divf %93, %94 : vector<32x1xf32>
    %96 = arith.mulf %90, %90 : vector<32x1xf32>
    %97 = arith.subf %95, %96 : vector<32x1xf32>
    %98 = vector.broadcast %90 : vector<32x1xf32> to vector<32x32xf32>
    %99 = arith.subf %86, %98 : vector<32x32xf32>
    %cst_49 = arith.constant 9.99999974E-6 : f32
    %100 = vector.broadcast %cst_49 : f32 to vector<32x1xf32>
    %101 = arith.addf %97, %100 : vector<32x1xf32>
    %102 = math.rsqrt %101 : vector<32x1xf32>
    %103 = vector.broadcast %102 : vector<32x1xf32> to vector<32x32xf32>
    %104 = arith.mulf %99, %103 : vector<32x32xf32>
    %105 = vector.broadcast %18 : vector<1x32xf32> to vector<32x32xf32>
    %106 = arith.mulf %104, %105 : vector<32x32xf32>
    %107 = vector.broadcast %19 : vector<1x32xf32> to vector<32x32xf32>
    %108 = arith.addf %106, %107 : vector<32x32xf32>
    %c1_i32 = arith.constant 1 : i32
    %109 = tpu.dynamic_rotate %108 by %c1_i32 dim 0 : vector<32x32xf32>, i32 -> vector<32x32xf32>
    %110 = arith.mulf %109, %10 : vector<32x32xf32>
    %c31_i32 = arith.constant 31 : i32
    %111 = tpu.dynamic_rotate %108 by %c31_i32 dim 0 : vector<32x32xf32>, i32 -> vector<32x32xf32>
    %112 = arith.mulf %111, %11 : vector<32x32xf32>
    %cst_50 = arith.constant dense<0.000000e+00> : vector<32x128xf32>
    %113 = tpu.matmul %110, %1, %cst_50 {dimension_numbers = #tpu.dot_dimension_numbers<[1], [0], [0], [1], [0, 0, 1, 1], [], []>} : vector<32x32xf32>, vector<32x128xf32>, vector<32x128xf32> -> vector<32x128xf32>
    %cst_51 = arith.constant dense<0.000000e+00> : vector<32x128xf32>
    %114 = tpu.matmul %108, %2, %cst_51 {dimension_numbers = #tpu.dot_dimension_numbers<[1], [0], [0], [1], [0, 0, 1, 1], [], []>} : vector<32x32xf32>, vector<32x128xf32>, vector<32x128xf32> -> vector<32x128xf32>
    %115 = arith.addf %113, %114 : vector<32x128xf32>
    %cst_52 = arith.constant dense<0.000000e+00> : vector<32x128xf32>
    %116 = tpu.matmul %112, %3, %cst_52 {dimension_numbers = #tpu.dot_dimension_numbers<[1], [0], [0], [1], [0, 0, 1, 1], [], []>} : vector<32x32xf32>, vector<32x128xf32>, vector<32x128xf32> -> vector<32x128xf32>
    %117 = arith.addf %115, %116 : vector<32x128xf32>
    %118 = vector.broadcast %13 : vector<1x128xf32> to vector<32x128xf32>
    %119 = arith.addf %117, %118 : vector<32x128xf32>
    %cst_53 = arith.constant 0.000000e+00 : f32
    %120 = vector.broadcast %cst_53 : f32 to vector<32x128xf32>
    %121 = arith.maximumf %119, %120 : vector<32x128xf32>
    %122 = vector.shape_cast %121 : vector<32x128xf32> to vector<2x16x128xf32>
    %cst_54 = arith.constant dense<0xFF800000> : vector<2x128xf32>
    %123 = vector.multi_reduction <maximumf>, %122, %cst_54 [1] : vector<2x16x128xf32> to vector<2x128xf32>
    %cst_55 = arith.constant dense<0.000000e+00> : vector<2x128xf32>
    %124 = tpu.matmul %123, %4, %cst_55 {dimension_numbers = #tpu.dot_dimension_numbers<[1], [0], [0], [1], [0, 0, 1, 1], [], []>} : vector<2x128xf32>, vector<128x128xf32>, vector<2x128xf32> -> vector<2x128xf32>
    %125 = vector.broadcast %14 : vector<1x128xf32> to vector<2x128xf32>
    %126 = arith.addf %124, %125 : vector<2x128xf32>
    %c0_56 = arith.constant 0 : index
    %c0_57 = arith.constant 0 : index
    %127 = vector.load %arg5[%c0_56, %c0_57] : memref<2x128xf32, #tpu.memory_space<vmem>>, vector<2x128xf32>
    tpu.vector_store %arg5[%c0_56, %c0_57], %126 {strides = array<i32>} : memref<2x128xf32, #tpu.memory_space<vmem>>, vector<2x128xf32>,
    return
  }
}

</mosaic_0001>

<bundles_post_ra>
// kernel: forward.1
= control target key start
LH: loop header
LB: loop body
LE: loop exit
PB: predicated region body
PF: predicated region fallthrough
CT: control target
= control target key end

     0   :  { %v2127_v2 = vmov 0   ;;  %s2644_s0 = inlined_call_operand.vmem [shape: s32[32,1], index: 0, kind: input, shape index: {}]   ;;  %s2645_s1 = inlined_call_operand.vmem [shape: f32[32,32], index: 1, kind: input, shape index: {}]   ;;  %s2646_s2 = inlined_call_operand.vmem [shape: f32[256,128], index: 2, kind: input, shape index: {}]   ;;  %s2647_s3 = inlined_call_operand.vmem [shape: f32[416,32], index: 3, kind: input, shape index: {}]   ;;  %s2648_s4 = inlined_call_operand.vmem [shape: f32[8,128], index: 4, kind: input, shape index: {}]   ;;  %s2649_s5 = inlined_call_operand.hbm [shape: f32[2,128], index: 5, kind: output, shape index: {}]  }
   0x1   :  { %v113_v0 = vld [vmem:[%s2644_s0] sm:$0xff]  ;;  %v115_v1 = vld [vmem:[%s2644_s0 + $0x10] sm:$0xff]  ;;  %2061 = vset.pattern.permute.xlu0 %v2127_v2  ;;  %2062 = vset.pattern.permute.xlu1 %v2127_v2  ;;  %v78_v4 = vld [vmem:[%s2647_s3 + $0xc8] sm:$0xff] }
   0x2   :  { %v77_v3 = vld [vmem:[%s2647_s3 + $0xc0] sm:$0xff]  ;;  %120 = vperm.xlu0 %2061, %v113_v0   ;;  %126 = vperm.xlu1 %2062, %v115_v1   ;;  %v114_v5 = vld [vmem:[%s2644_s0 + $0x8] sm:$0xff]  ;;  %v79_v7 = vld [vmem:[%s2647_s3 + $0xd0] sm:$0xff] }
   0x3   :  { %v1891_v6 = vpack.c.bf16 %v78_v4, %v77_v3  ;;  %v80_v8 = vld [vmem:[%s2647_s3 + $0xd8] sm:$0xff]  ;;  %v81_v11 = vld [vmem:[%s2647_s3 + $0xe0] sm:$0xff]  ;;  %v82_v12 = vld [vmem:[%s2647_s3 + $0xe8] sm:$0xff] }
   0x4   :  { %v116_v9 = vld [vmem:[%s2644_s0 + $0x18] sm:$0xff]  ;;  %v1895_v10 = vpack.c.bf16 %v80_v8, %v79_v7  ;;  %v1899_v13 = vpack.c.bf16 %v82_v12, %v81_v11 }
   0x5   :  { %1892 = vmatprep.subr.bf16.mxu0 %v1891_v6 }
   0x6   :  { %1894 = vmatpush3.bf16.msra.mxu0 %v1891_v6  ;;  %123 = vperm.xlu0 %2061, %v114_v5  }
   0x7   :  { %129 = vperm.xlu1 %2062, %v116_v9  }
   0x8   :  { %10 = vsyncpa [#allocation3], 0  ;;  %1896 = vmatprep.subr.bf16.mxu0 %v1895_v10  ;;  %v83_v14 = vld [vmem:[%s2647_s3 + $0xf0] sm:$0xff]  ;;  %v84_v15 = vld [vmem:[%s2647_s3 + $0xf8] sm:$0xff]  ;;  %v117_v32 = vlaneseq  ;;  %v2128_v36 = vmov 1.0   ;;  %vm228_vm4 = vcmask 261120  }
   0x9   :  { %v1903_v16 = vpack.c.bf16 %v84_v15, %v83_v14  ;;  %v85_v17 = vld [vmem:[%s2647_s3 + $0x100] sm:$0xff]  ;;  %v86_v18 = vld [vmem:[%s2647_s3 + $0x108] sm:$0xff]  ;;  %v87_v20 = vld [vmem:[%s2647_s3 + $0x110] sm:$0xff]  ;;  %vm2130_vm8 = vmmov 0   ;;  %vm1407_vm9 = vcmask 1041409   ;;  %s2132_s29 = smov [#allocation2]  }
   0xa   :  { %1898 = vmatpush3.bf16.msra.mxu0 %v1895_v10  ;;  %v1907_v19 = vpack.c.bf16 %v86_v18, %v85_v17  ;;  %v88_v21 = vld [vmem:[%s2647_s3 + $0x118] sm:$0xff]  ;;  %v89_v23 = vld [vmem:[%s2647_s3 + $0x120] sm:$0xff]  ;;  %v90_v24 = vld [vmem:[%s2647_s3 + $0x128] sm:$0xff]  ;;  %v118_v33 = vand.u32 127, %v117_v32 }
   0xb   :  { %1900 = vmatprep.subr.bf16.mxu0 %v1899_v13  ;;  %v1911_v22 = vpack.c.bf16 %v88_v21, %v87_v20  ;;  %v1915_v25 = vpack.c.bf16 %v90_v24, %v89_v23  ;;  %v91_v26 = vld [vmem:[%s2647_s3 + $0x130] sm:$0xff]  ;;  %v92_v27 = vld [vmem:[%s2647_s3 + $0x138] sm:$0xff]  ;;  %v53_v29 = vld [vmem:[%s2647_s3] sm:$0xff] }
   0xc   :  { %v1919_v28 = vpack.c.bf16 %v92_v27, %v91_v26  ;;  %v54_v30 = vld [vmem:[%s2647_s3 + $0x8] sm:$0xff]  ;;  %v55_v39 = vld [vmem:[%s2647_s3 + $0x10] sm:$0xff]  ;;  %v56_v40 = vld [vmem:[%s2647_s3 + $0x18] sm:$0xff] }
   0xd   :  { %v1923_v31 = vpack.c.bf16 %v54_v30, %v53_v29  ;;  %v1927_v41 = vpack.c.bf16 %v56_v40, %v55_v39  ;;  %v94_v42 = vld [vmem:[%s2647_s3 + $0x148] sm:$0xff]  ;;  %v93_v43 = vld [vmem:[%s2647_s3 + $0x140] sm:$0xff]  ;;  %v96_v48 = vld [vmem:[%s2647_s3 + $0x158] sm:$0xff] }
   0xe   :  { %1902 = vmatpush3.bf16.msra.mxu0 %v1899_v13  ;;  %v95_v49 = vld [vmem:[%s2647_s3 + $0x150] sm:$0xff]  ;;  %vm1932_vm5 = vmpackc.low %vm228_vm4, %vm228_vm4  ;;  %v327_v60 = vld [vmem:[%s2645_s1 + $0x8] sm:$0xff] }
   0xf   :  { %1904 = vmatprep.subr.bf16.mxu0 %v1903_v16  ;;  %v326_v61 = vld [vmem:[%s2645_s1] sm:$0xff]  ;;  %v328_v3 = vld [vmem:[%s2645_s1 + $0x10] sm:$0xff]  ;;  %v329_v6 = vld [vmem:[%s2645_s1 + $0x18] sm:$0xff]  ;;  %s1487_s1 = sshll.u32 %s2132_s29, 4  ;;  %s1488_s1 = int_to_ptr.vmem [resolvable:$true] %s1487_s1 }
  0x10   :  { %s2103_s30 = scalar_lea.vmem %s1488_s1, 32  ;;  %p2108_p1 = scmp.lt.s32.totalorder %s1488_s1, %s1488_s1 }
  0x11   :  { %p2104_p0 = scmp.ne.s32.totalorder %s1488_s1, %s2103_s30  ;;  %p2109_p2 = scmp.lt.s32.totalorder %s2103_s30, %s2103_s30 }
  0x12   :  { %1906 = vmatpush3.bf16.msra.mxu0 %v1903_v16 }
  0x13   :  { %1908 = vmatprep.subr.bf16.mxu0 %v1907_v19  ;;  %p2110_p3 = por %p2109_p2, %p2108_p1 }
  0x15   :  { %p2111_p4 = pnand %p2110_p3, %p2104_p0 }
  0x16   :  { %1910 = vmatpush3.bf16.msra.mxu0 %v1907_v19 }
  0x17   :  { %1912 = vmatprep.subr.bf16.mxu0 %v1911_v22 }
  0x1a   :  { %1914 = vmatpush3.bf16.msra.mxu0 %v1911_v22 }
  0x1b   :  { %1916 = vmatprep.subr.bf16.mxu0 %v1915_v25 }
  0x1e   :  { %1918 = vmatpush3.bf16.msra.mxu0 %v1915_v25 }
  0x1f   :  { %1920 = vmatprep.subr.bf16.mxu0 %v1919_v28 }
  0x22   :  { %1922 = vmatpush3.bf16.msra.mxu0 %v1919_v28 }
  0x23   :  { %1924 = vmatprep.subr.bf16.mxu0 %v1923_v31 }
  0x81   :  { %v121_v34 = vpop.permute.xlu0 %120  ;;  %v127_v35 = vpop.permute.xlu1 %126 }
  0x82   :  { %vm131_vm0 = vcmp.eq.s32.totalorder %v118_v33, %v121_v34  ;;  %vm133_vm1 = vcmp.eq.s32.totalorder %v118_v33, %v127_v35  ;;  %v58_v34 = vld [vmem:[%s2647_s3 + $0x28] sm:$0xff]  ;;  %v59_v35 = vld [vmem:[%s2647_s3 + $0x30] sm:$0xff] }
  0x83   :  { %1700 = vmatprep.mubr.msk.f32.mxu0 %vm131_vm0, %v2128_v36 }
  0x85   :  { %v124_v37 = vpop.permute.xlu0 %123 }
  0x86   :  { %vm132_vm2 = vcmp.eq.s32.totalorder %v118_v33, %v124_v37  ;;  %v130_v38 = vpop.permute.xlu1 %129  ;;  %v60_v37 = vld [vmem:[%s2647_s3 + $0x38] sm:$0xff] }
  0x87   :  { %1701 = vmatmul.mubr.msk.f32.vlgmr.msra.gmra.mrb[0].mxu0 %vm132_vm2, %v2128_v36  ;;  %vm134_vm3 = vcmp.eq.s32.totalorder %v118_v33, %v130_v38  ;;  %v57_v33 = vld [vmem:[%s2647_s3 + $0x20] sm:$0xff]  ;;  %v1955_v38 = vpack.c.bf16 %v60_v37, %v59_v35 }
  0x88   :  { %1703 = vmatprep.mubr.msk.f32.mxu0 %vm133_vm1, %v2128_v36  ;;  %1926 = vmatpush3.bf16.msra.mxu0 %v1923_v31 }
  0x89   :  { %1928 = vmatprep.subr.bf16.mxu0 %v1927_v41 }
  0x8b   :  { %1704 = vmatmul.mubr.msk.f32.gmra.mrb[2].mxu0 %vm134_vm3, %v2128_v36  ;;  %v1951_v36 = vpack.c.bf16 %v58_v34, %v57_v33 }
  0x8c   :  { %1930 = vmatpush3.bf16.msra.mxu0 %v1927_v41 }
  0x8d   :  { %1952 = vmatprep.subr.bf16.mxu0 %v1951_v36 }
 0x15a   :  { %v1702_v44 = vpop.f32.mrb[0].mxu0 }
 0x15b   :  { %v2242_v45 = vadd.f32 %v1702_v44, %v94_v42  ;;  %v209_v46 = vpop.f32.mrb[1].mxu0 }
 0x15c   :  { %v2244_v47 = vadd.f32 %v209_v46, %v93_v43 }
 0x15e   :  { %v1931_v50 = vpack.c.bf16 %v2242_v45, %v2244_v47  ;;  %v1705_v51 = vpop.f32.mrb[2].mxu0  ;;  %1714 = vmatprep.mubr.msk.f32.mxu0 %vm228_vm4, %v2244_v47 }
 0x15f   :  { %v2258_v52 = vadd.f32 %v1705_v51, %v96_v48  ;;  %v219_v53 = vpop.f32.mrb[3].mxu0  ;;  %1715 = vmatmul.mubr.msk.f32.vlgmr.msra.gmra.mrb[4].mxu0 %vm228_vm4, %v2242_v45 }
 0x160   :  { %v2262_v54 = vadd.f32 %v219_v53, %v95_v49  ;;  %1933 = vmatprep.subr.msk.bf16.mxu1 %vm1932_vm5, %v1931_v50  ;;  %1954 = vmatpush3.bf16.msra.mxu0 %v1951_v36 }
 0x161   :  { %1936 = vmatpush3.bf16.xpose.msk.msra.mxu1 %vm1932_vm5, %v1931_v50  ;;  %1956 = vmatprep.subr.bf16.mxu0 %v1955_v38 }
 0x162   :  { %v1937_v55 = vpack.c.bf16 %v2258_v52, %v2262_v54  ;;  %1717 = vmatprep.mubr.msk.f32.mxu0 %vm228_vm4, %v2262_v54 }
 0x163   :  { %1718 = vmatmul.mubr.msk.f32.gmra.mrb[6].mxu0 %vm228_vm4, %v2258_v52 }
 0x164   :  { %1939 = vmatprep.subr.msk.bf16.mxu1 %vm1932_vm5, %v1937_v55  ;;  %1958 = vmatpush3.bf16.msra.mxu0 %v1955_v38 }
 0x169   :  { %1942 = vmatpush3.bf16.xpose.msk.msra.mxu1 %vm1932_vm5, %v1937_v55 }
 0x16a   :  { %1944 = vmatprep.subr.bf16.mxu1 %v1931_v50 }
 0x232   :  { %v1716_v56 = vpop.f32.mrb[4].mxu0 }
 0x233   :  { %v307_v57 = vpop.f32.mrb[5].mxu0 }
 0x234   :  { %1728 = vmatprep.mubr.msk.f32.mxu1 %vm228_vm4, %v307_v57 }
 0x235   :  { %1729 = vmatmul.mubr.msk.f32.vlgmr.msra.gmra.mrb[0].mxu1 %vm228_vm4, %v1716_v56 }
 0x236   :  { %1946 = vmatpush3.bf16.msra.mxu1 %v1931_v50  ;;  %v1719_v58 = vpop.f32.mrb[6].mxu0 }
 0x237   :  { %1948 = vmatprep.subr.bf16.mxu1 %v1937_v55  ;;  %v317_v59 = vpop.f32.mrb[7].mxu0 }
 0x238   :  { %1731 = vmatprep.mubr.msk.f32.mxu1 %vm228_vm4, %v317_v59 }
 0x239   :  { %1732 = vmatmul.mubr.msk.f32.gmra.mrb[2].mxu1 %vm228_vm4, %v1719_v58 }
 0x23a   :  { %1950 = vmatpush3.bf16.msra.mxu1 %v1937_v55 }
 0x308   :  { %v1730_v62 = vpop.f32.mrb[0].mxu1 }
 0x309   :  { %v414_v63 = vadd.f32 %v1730_v62, %v327_v60  ;;  %v408_v0 = vpop.f32.mrb[1].mxu1 }
 0x30a   :  { %v409_v1 = vadd.f32 %v408_v0, %v326_v61 }
 0x30b   :  { %v430_v2 = vsel %vm228_vm4, %v414_v63, -inf }
 0x30c   :  { %431 = vmax.xlane.f32.xlu1 %v430_v2  ;;  %v1733_v4 = vpop.f32.mrb[2].mxu1  ;;  %v427_v5 = vsel %vm228_vm4, %v409_v1, -inf }
 0x30d   :  { %428 = vmax.xlane.f32.xlu0 %v427_v5  ;;  %v418_v7 = vpop.f32.mrb[3].mxu1  ;;  %v424_v9 = vadd.f32 %v1733_v4, %v329_v6 }
 0x30e   :  { %v419_v8 = vadd.f32 %v418_v7, %v328_v3 }
 0x30f   :  { %v436_v11 = vsel %vm228_vm4, %v424_v9, -inf }
 0x310   :  { %v433_v10 = vsel %vm228_vm4, %v419_v8, -inf }
 0x311   :  { %434 = vmax.xlane.f32.xlu0 %v433_v10 }
 0x315   :  { %437 = vmax.xlane.f32.xlu0 %v436_v11  ;;  %v21_v11 = vld [vmem:[%s2646_s2] sm:$0xff] }
 0x399   :  { %v432_v12 = vpop.xlane.xlu1 %431 }
 0x39a   :  { %v440_v13 = vsub.f32 %v414_v63, %v432_v12  ;;  %v429_v14 = vpop.xlane.xlu0 %428  ;;  %v22_v12 = vld [vmem:[%s2646_s2 + $0x8] sm:$0xff] }
 0x39b   :  { %v439_v15 = vsub.f32 %v409_v1, %v429_v14  ;;  %v23_v14 = vld [vmem:[%s2646_s2 + $0x10] sm:$0xff] }
 0x39c   :  { %v445_v16 = vmul.f32 1.442695, %v440_v13  ;;  %v1959_v13 = vpack.c.bf16 %v22_v12, %v21_v11  ;;  %v66_v11 = vld [vmem:[%s2647_s3 + $0x68] sm:$0xff] }
 0x39d   :  { %v443_v17 = vmul.f32 1.442695, %v439_v15  ;;  %v24_v15 = vld [vmem:[%s2646_s2 + $0x18] sm:$0xff] }
 0x39e   :  { %2063 = vpow2.f32 %v445_v16  ;;  %v435_v18 = vpop.xlane.xlu0 %434  ;;  %1960 = vmatprep.subr.bf16.mxu1 %v1959_v13  ;;  %v1963_v16 = vpack.c.bf16 %v24_v15, %v23_v14  ;;  %v68_v14 = vld [vmem:[%s2647_s3 + $0x78] sm:$0xff] }
 0x39f   :  { %2065 = vpow2.f32 %v443_v17  ;;  %v441_v19 = vsub.f32 %v419_v8, %v435_v18  ;;  %v61_v17 = vld [vmem:[%s2647_s3 + $0x40] sm:$0xff]  ;;  %v62_v18 = vld [vmem:[%s2647_s3 + $0x48] sm:$0xff] }
 0x3a1   :  { %v447_v20 = vmul.f32 1.442695, %v441_v19  ;;  %v1967_v19 = vpack.c.bf16 %v62_v18, %v61_v17  ;;  %v70_v17 = vld [vmem:[%s2647_s3 + $0x88] sm:$0xff] }
 0x3a2   :  { %v438_v21 = vpop.xlane.xlu0 %437 }
 0x3a3   :  { %2067 = vpow2.f32 %v447_v20  ;;  %v442_v22 = vsub.f32 %v424_v9, %v438_v21  ;;  %1968 = vmatprep.subr.bf16.mxu0 %v1967_v19 }
 0x3a5   :  { %v449_v23 = vmul.f32 1.442695, %v442_v22 }
 0x3a7   :  { %2069 = vpow2.f32 %v449_v23 }
 0x3a8   :  { %v2064_v24 = vpop.eup %2063 }
 0x3a9   :  { %v2066_v25 = vpop.eup %2065  ;;  %v454_v26 = vsel %vm228_vm4, %v2064_v24, 0.0 }
 0x3aa   :  { %455 = vadd.xlane.f32.xlu0 %v454_v26  ;;  %v451_v27 = vsel %vm228_vm4, %v2066_v25, 0.0 }
 0x3ab   :  { %452 = vadd.xlane.f32.xlu1 %v451_v27 }
 0x3ad   :  { %v2068_v28 = vpop.eup %2067 }
 0x3ae   :  { %v457_v29 = vsel %vm228_vm4, %v2068_v28, 0.0 }
 0x3af   :  { %458 = vadd.xlane.f32.xlu1 %v457_v29 }
 0x3b1   :  { %v2070_v30 = vpop.eup %2069 }
 0x3b2   :  { %v460_v31 = vsel %vm228_vm4, %v2070_v30, 0.0 }
 0x3b3   :  { %461 = vadd.xlane.f32.xlu0 %v460_v31 }
 0x437   :  { %v456_v39 = vpop.xlane.xlu0 %455 }
 0x438   :  { %2071 = vrcp.f32 %v456_v39  ;;  %v453_v40 = vpop.xlane.xlu1 %452 }
 0x439   :  { %2073 = vrcp.f32 %v453_v40 }
 0x43c   :  { %v459_v41 = vpop.xlane.xlu1 %458 }
 0x43d   :  { %2075 = vrcp.f32 %v459_v41 }
 0x440   :  { %v462_v42 = vpop.xlane.xlu0 %461 }
 0x441   :  { %2077 = vrcp.f32 %v462_v42 }
 0x442   :  { %v2072_v43 = vpop.eup %2071 }
 0x443   :  { %v2074_v44 = vpop.eup %2073  ;;  %v468_v48 = vmul.f32 %v2072_v43, %v2064_v24 }
 0x444   :  { %v467_v46 = vmul.f32 %v2074_v44, %v2066_v25 }
 0x446   :  { %1742 = vmatprep.mubr.msk.f32.mxu1 %vm228_vm4, %v467_v46 }
 0x447   :  { %v2076_v49 = vpop.eup %2075  ;;  %1743 = vmatmul.mubr.msk.f32.vlgmr.msra.gmra.mrb[4].mxu1 %vm228_vm4, %v468_v48 }
 0x448   :  { %v469_v50 = vmul.f32 %v2076_v49, %v2068_v28  ;;  %1962 = vmatpush3.bf16.msra.mxu1 %v1959_v13  ;;  %v67_v13 = vld [vmem:[%s2647_s3 + $0x70] sm:$0xff] }
 0x449   :  { %1964 = vmatprep.subr.bf16.mxu1 %v1963_v16  ;;  %v1979_v15 = vpack.c.bf16 %v68_v14, %v67_v13  ;;  %v1530_v14 = vld [vmem:[%s2648_s4 + $0x3] ss:$0 sm:$0xff] }
 0x44a   :  { %1745 = vmatprep.mubr.msk.f32.mxu1 %vm228_vm4, %v469_v50 }
 0x44b   :  { %v2078_v51 = vpop.eup %2077 }
 0x44c   :  { %v470_v53 = vmul.f32 %v2078_v51, %v2070_v30  ;;  %1966 = vmatpush3.bf16.msra.mxu1 %v1963_v16  ;;  %v69_v16 = vld [vmem:[%s2647_s3 + $0x80] sm:$0xff] }
 0x44d   :  { %v1983_v18 = vpack.c.bf16 %v70_v17, %v69_v16 }
 0x44e   :  { %1746 = vmatmul.mubr.msk.f32.gmra.mrb[6].mxu1 %vm228_vm4, %v470_v53 }
 0x51a   :  { %v1744_v55 = vpop.f32.mrb[4].mxu1 }
 0x51b   :  { %v549_v56 = vpop.f32.mrb[5].mxu1 }
 0x51c   :  { %1756 = vmatprep.mubr.msk.f32.mxu0 %vm228_vm4, %v549_v56  ;;  %v1523_v56 = vld [vmem:[%s2648_s4 + $0x4] ss:$0 sm:$0xff] }
 0x51d   :  { %1757 = vmatmul.mubr.msk.f32.vlgmr.msra.gmra.mrb[8].mxu0 %vm228_vm4, %v1744_v55 }
 0x51e   :  { %1970 = vmatpush3.bf16.msra.mxu0 %v1967_v19  ;;  %v71_v19 = vld [vmem:[%s2647_s3 + $0x90] sm:$0xff] }
 0x521   :  { %v1747_v57 = vpop.f32.mrb[6].mxu1 }
 0x522   :  { %v559_v58 = vpop.f32.mrb[7].mxu1 }
 0x523   :  { %1759 = vmatprep.mubr.msk.f32.mxu0 %vm228_vm4, %v559_v58 }
 0x524   :  { %1760 = vmatmul.mubr.msk.f32.gmra.mrb[10].mxu0 %vm228_vm4, %v1747_v57 }
 0x5f0   :  { %v1758_v59 = vpop.f32.mrb[8].mxu0 }
 0x5f1   :  { %v2315_v60 = vadd.f32 %v1758_v59, %v2242_v45  ;;  %v646_v61 = vpop.f32.mrb[9].mxu0 }
 0x5f2   :  { %v2318_v62 = vadd.f32 %v646_v61, %v2244_v47  ;;  %v1524_v61 = vld [vmem:[%s2648_s4 + $0x5] ss:$0 sm:$0xff] }
 0x5f3   :  { %v672_v63 = vsel %vm228_vm4, %v2315_v60, 0.0  ;;  %v687_v0 = vmul.f32 %v2315_v60, %v2315_v60 }
 0x5f4   :  { %673 = vadd.xlane.f32.xlu0 %v672_v63  ;;  %v669_v1 = vsel %vm228_vm4, %v2318_v62, 0.0  ;;  %v686_v2 = vmul.f32 %v2318_v62, %v2318_v62 }
 0x5f5   :  { %670 = vadd.xlane.f32.xlu1 %v669_v1  ;;  %v693_v3 = vsel %vm228_vm4, %v687_v0, 0.0 }
 0x5f6   :  { %v690_v5 = vsel %vm228_vm4, %v686_v2, 0.0 }
 0x5f7   :  { %v1761_v45 = vpop.f32.mrb[10].mxu0 }
 0x5f8   :  { %v2330_v47 = vadd.f32 %v1761_v45, %v2258_v52  ;;  %694 = vadd.xlane.f32.xlu0 %v693_v3  ;;  %v656_v4 = vpop.f32.mrb[11].mxu0 }
 0x5f9   :  { %v2334_v6 = vadd.f32 %v656_v4, %v2262_v54  ;;  %691 = vadd.xlane.f32.xlu1 %v690_v5 }
 0x5fa   :  { %v678_v7 = vsel %vm228_vm4, %v2330_v47, 0.0  ;;  %v689_v9 = vmul.f32 %v2330_v47, %v2330_v47 }
 0x5fb   :  { %v675_v8 = vsel %vm228_vm4, %v2334_v6, 0.0  ;;  %v688_v52 = vmul.f32 %v2334_v6, %v2334_v6 }
 0x5fc   :  { %679 = vadd.xlane.f32.xlu0 %v678_v7  ;;  %v699_v10 = vsel %vm228_vm4, %v689_v9, 0.0 }
 0x5fd   :  { %676 = vadd.xlane.f32.xlu1 %v675_v8  ;;  %v696_v54 = vsel %vm228_vm4, %v688_v52, 0.0 }
 0x600   :  { %700 = vadd.xlane.f32.xlu0 %v699_v10 }
 0x601   :  { %697 = vadd.xlane.f32.xlu1 %v696_v54  ;;  %v65_v54 = vld [vmem:[%s2647_s3 + $0x60] sm:$0xff] }
 0x602   :  { %v1975_v12 = vpack.c.bf16 %v66_v11, %v65_v54 }
 0x681   :  { %v674_v20 = vpop.xlane.xlu0 %673 }
 0x682   :  { %v683_v21 = vmul.f32 0.03125, %v674_v20  ;;  %v671_v22 = vpop.xlane.xlu1 %670  ;;  %v72_v20 = vld [vmem:[%s2647_s3 + $0x98] sm:$0xff] }
 0x683   :  { %v682_v23 = vmul.f32 0.03125, %v671_v22  ;;  %v1987_v22 = vpack.c.bf16 %v72_v20, %v71_v19 }
 0x684   :  { %v707_v25 = vmul.f32 %v683_v21, %v683_v21  ;;  %v715_v51 = vsub.f32 %v2315_v60, %v683_v21  ;;  %v73_v21 = vld [vmem:[%s2647_s3 + $0xa0] sm:$0xff] }
 0x685   :  { %v695_v24 = vpop.xlane.xlu0 %694  ;;  %v706_v28 = vmul.f32 %v682_v23, %v682_v23  ;;  %v714_v55 = vsub.f32 %v2318_v62, %v682_v23  ;;  %v74_v23 = vld [vmem:[%s2647_s3 + $0xa8] sm:$0xff] }
 0x686   :  { %v703_v26 = vmul.f32 0.03125, %v695_v24  ;;  %v692_v27 = vpop.xlane.xlu1 %691  ;;  %v1991_v24 = vpack.c.bf16 %v74_v23, %v73_v21 }
 0x687   :  { %v702_v29 = vmul.f32 0.03125, %v692_v27 }
 0x688   :  { %v711_v30 = vsub.f32 %v703_v26, %v707_v25  ;;  %v75_v25 = vld [vmem:[%s2647_s3 + $0xb0] sm:$0xff]  ;;  %v76_v26 = vld [vmem:[%s2647_s3 + $0xb8] sm:$0xff] }
 0x689   :  { %v710_v31 = vsub.f32 %v702_v29, %v706_v28  ;;  %v680_v33 = vpop.xlane.xlu0 %679  ;;  %v1995_v27 = vpack.c.bf16 %v76_v26, %v75_v25  ;;  %v1525_v28 = vld [vmem:[%s2648_s4] ss:$0 sm:$0xff] }
 0x68a   :  { %v719_v34 = vadd.f32 1e-05, %v711_v30  ;;  %v685_v35 = vmul.f32 0.03125, %v680_v33  ;;  %v677_v36 = vpop.xlane.xlu1 %676 }
 0x68b   :  { %v718_v37 = vadd.f32 1e-05, %v710_v31  ;;  %v684_v38 = vmul.f32 0.03125, %v677_v36 }
 0x68c   :  { %2079 = vrsqrt.f32 %v719_v34  ;;  %v709_v40 = vmul.f32 %v685_v35, %v685_v35  ;;  %v717_v60 = vsub.f32 %v2330_v47, %v685_v35  ;;  %v63_v47 = vld [vmem:[%s2647_s3 + $0x50] sm:$0xff] }
 0x68d   :  { %2081 = vrsqrt.f32 %v718_v37  ;;  %v701_v39 = vpop.xlane.xlu0 %700  ;;  %v708_v43 = vmul.f32 %v684_v38, %v684_v38  ;;  %v716_v45 = vsub.f32 %v2334_v6, %v684_v38  ;;  %v64_v6 = vld [vmem:[%s2647_s3 + $0x58] sm:$0xff] }
 0x68e   :  { %v705_v41 = vmul.f32 0.03125, %v701_v39  ;;  %v698_v42 = vpop.xlane.xlu1 %697  ;;  %v1971_v10 = vpack.c.bf16 %v64_v6, %v63_v47 }
 0x68f   :  { %v704_v44 = vmul.f32 0.03125, %v698_v42 }
 0x690   :  { %v713_v46 = vsub.f32 %v705_v41, %v709_v40  ;;  %1972 = vmatprep.subr.bf16.mxu0 %v1971_v10 }
 0x691   :  { %v712_v48 = vsub.f32 %v704_v44, %v708_v43  ;;  %1974 = vmatpush3.bf16.msra.mxu0 %v1971_v10 }
 0x692   :  { %v721_v49 = vadd.f32 1e-05, %v713_v46  ;;  %1976 = vmatprep.subr.bf16.mxu0 %v1975_v12 }
 0x693   :  { %v720_v50 = vadd.f32 1e-05, %v712_v48 }
 0x694   :  { %2083 = vrsqrt.f32 %v721_v49 }
 0x695   :  { %2085 = vrsqrt.f32 %v720_v50  ;;  %1978 = vmatpush3.bf16.msra.mxu0 %v1975_v12 }
 0x696   :  { %v2080_v53 = vpop.eup %2079  ;;  %1980 = vmatprep.subr.bf16.mxu0 %v1979_v15 }
 0x697   :  { %v2082_v57 = vpop.eup %2081  ;;  %v727_v58 = vmul.f32 %v2080_v53, %v715_v51 }
 0x698   :  { %v726_v59 = vmul.f32 %v2082_v57, %v714_v55 }
 0x699   :  { %v735_v63 = vmul.f32 %v1523_v56, %v727_v58  ;;  %1982 = vmatpush3.bf16.msra.mxu0 %v1979_v15 }
 0x69a   :  { %v734_v0 = vmul.f32 %v1523_v56, %v726_v59  ;;  %1984 = vmatprep.subr.bf16.mxu0 %v1983_v18 }
 0x69b   :  { %v2375_v2 = vadd.f32 %v1524_v61, %v735_v63 }
 0x69c   :  { %v2372_v1 = vadd.f32 %v1524_v61, %v734_v0 }
 0x69d   :  { %1986 = vmatpush3.bf16.msra.mxu0 %v1983_v18 }
 0x69e   :  { %v2084_v62 = vpop.eup %2083  ;;  %1770 = vmatprep.mubr.msk.f32.mxu1 %vm228_vm4, %v2372_v1  ;;  %1988 = vmatprep.subr.bf16.mxu0 %v1987_v22 }
 0x69f   :  { %v2086_v3 = vpop.eup %2085  ;;  %1771 = vmatmul.mubr.msk.f32.vlgmr.msra.gmra.mrb[8].mxu1 %vm228_vm4, %v2375_v2  ;;  %v729_v4 = vmul.f32 %v2084_v62, %v717_v60 }
 0x6a0   :  { %v728_v5 = vmul.f32 %v2086_v3, %v716_v45 }
 0x6a1   :  { %v737_v7 = vmul.f32 %v1523_v56, %v729_v4  ;;  %1990 = vmatpush3.bf16.msra.mxu0 %v1987_v22 }
 0x6a2   :  { %v736_v8 = vmul.f32 %v1523_v56, %v728_v5  ;;  %1992 = vmatprep.subr.bf16.mxu0 %v1991_v24 }
 0x6a3   :  { %v2384_v52 = vadd.f32 %v1524_v61, %v737_v7 }
 0x6a4   :  { %v2382_v9 = vadd.f32 %v1524_v61, %v736_v8 }
 0x6a5   :  { %1994 = vmatpush3.bf16.msra.mxu0 %v1991_v24 }
 0x6a6   :  { %1773 = vmatprep.mubr.msk.f32.mxu1 %vm228_vm4, %v2382_v9  ;;  %1996 = vmatprep.subr.bf16.mxu0 %v1995_v27 }
 0x6a7   :  { %1774 = vmatmul.mubr.msk.f32.gmra.mrb[10].mxu1 %vm228_vm4, %v2384_v52 }
 0x6a9   :  { %1998 = vmatpush3.bf16.msra.mxu0 %v1995_v27 }
 0x772   :  { %v1772_v29 = vpop.f32.mrb[8].mxu1 }
 0x773   :  { %v834_v30 = vadd.f32 %v1772_v29, %v1525_v28  ;;  %v828_v31 = vpop.f32.mrb[9].mxu1 }
 0x774   :  { %v829_v33 = vadd.f32 %v1525_v28, %v828_v31 }
 0x775   :  { %v852_v34 = vmul.f32 0.044715, %v834_v30  ;;  %v848_v4 = vmul.f32 0.5, %v834_v30 }
 0x776   :  { %v851_v35 = vmul.f32 0.044715, %v829_v33  ;;  %v847_v45 = vmul.f32 0.5, %v829_v33 }
 0x777   :  { %v856_v36 = vmul.f32 %v852_v34, %v834_v30 }
 0x778   :  { %v855_v37 = vmul.f32 %v851_v35, %v829_v33 }
 0x779   :  { %v860_v38 = vmul.f32 %v856_v36, %v834_v30  ;;  %v29_v36 = vld [vmem:[%s2646_s2 + $0x40] sm:$0xff] }
 0x77a   :  { %v1775_v39 = vpop.f32.mrb[10].mxu1  ;;  %v859_v40 = vmul.f32 %v855_v37, %v829_v33  ;;  %v30_v37 = vld [vmem:[%s2646_s2 + $0x48] sm:$0xff] }
 0x77b   :  { %v864_v41 = vadd.f32 %v860_v38, %v834_v30  ;;  %v844_v42 = vadd.f32 %v1775_v39, %v1525_v28  ;;  %v838_v43 = vpop.f32.mrb[11].mxu1  ;;  %v31_v38 = vld [vmem:[%s2646_s2 + $0x50] sm:$0xff]  ;;  %v1999_v39 = vpack.c.bf16 %v30_v37, %v29_v36 }
 0x77c   :  { %v839_v44 = vadd.f32 %v1525_v28, %v838_v43  ;;  %v863_v46 = vadd.f32 %v859_v40, %v829_v33  ;;  %v32_v40 = vld [vmem:[%s2646_s2 + $0x58] sm:$0xff]  ;;  %v26_v43 = vld [vmem:[%s2646_s2 + $0x28] sm:$0xff] }
 0x77d   :  { %v868_v48 = vmul.f32 0.7978846, %v864_v41  ;;  %v854_v49 = vmul.f32 0.044715, %v844_v42  ;;  %v850_v11 = vmul.f32 0.5, %v844_v42  ;;  %v2003_v41 = vpack.c.bf16 %v32_v40, %v31_v38  ;;  %2000 = vmatprep.subr.bf16.mxu1 %v1999_v39 }
 0x77e   :  { %v853_v50 = vmul.f32 0.044715, %v839_v44  ;;  %v867_v51 = vmul.f32 0.7978846, %v863_v46  ;;  %v849_v10 = vmul.f32 0.5, %v839_v44  ;;  %2002 = vmatpush3.bf16.msra.mxu1 %v1999_v39  ;;  %v97_v39 = vld [vmem:[%s2647_s3 + $0x160] sm:$0xff] }
 0x77f   :  { %2087 = vtanh.f32 %v868_v48  ;;  %v858_v53 = vmul.f32 %v854_v49, %v844_v42  ;;  %2004 = vmatprep.subr.bf16.mxu1 %v2003_v41 }
 0x780   :  { %v857_v55 = vmul.f32 %v853_v50, %v839_v44  ;;  %2089 = vtanh.f32 %v867_v51 }
 0x781   :  { %v862_v56 = vmul.f32 %v858_v53, %v844_v42 }
 0x782   :  { %v861_v57 = vmul.f32 %v857_v55, %v839_v44  ;;  %2006 = vmatpush3.bf16.msra.mxu1 %v2003_v41 }
 0x783   :  { %v866_v58 = vadd.f32 %v862_v56, %v844_v42  ;;  %v25_v42 = vld [vmem:[%s2646_s2 + $0x20] sm:$0xff] }
 0x784   :  { %v865_v59 = vadd.f32 %v861_v57, %v839_v44  ;;  %v2007_v44 = vpack.c.bf16 %v26_v43, %v25_v42  ;;  %v98_v43 = vld [vmem:[%s2647_s3 + $0x168] sm:$0xff] }
 0x785   :  { %v870_v61 = vmul.f32 0.7978846, %v866_v58 }
 0x786   :  { %v869_v63 = vmul.f32 0.7978846, %v865_v59  ;;  %2008 = vmatprep.subr.bf16.mxu1 %v2007_v44 }
 0x787   :  { %2091 = vtanh.f32 %v870_v61 }
 0x788   :  { %2093 = vtanh.f32 %v869_v63 }
 0x789   :  { %v2088_v0 = vpop.eup %2087 }
 0x78a   :  { %v2090_v60 = vpop.eup %2089  ;;  %v876_v62 = vadd.f32 1.0, %v2088_v0 }
 0x78b   :  { %v875_v3 = vadd.f32 1.0, %v2090_v60 }
 0x78c   :  { %v880_v7 = vmul.f32 %v876_v62, %v848_v4 }
 0x78d   :  { %v879_v5 = vmul.f32 %v875_v3, %v847_v45 }
 0x78f   :  { %1808 = vmatprep.mubr.f32.mxu0 %v879_v5 }
 0x790   :  { %1809 = vmatmul.mubr.f32.vlgmr.msra.gmra.mrb[12].mxu0 %v880_v7 }
 0x791   :  { %v2092_v8 = vpop.eup %2091 }
 0x792   :  { %v2094_v47 = vpop.eup %2093  ;;  %v878_v6 = vadd.f32 1.0, %v2092_v8 }
 0x793   :  { %v877_v54 = vadd.f32 1.0, %v2094_v47 }
 0x794   :  { %v882_v13 = vmul.f32 %v878_v6, %v850_v11 }
 0x795   :  { %v881_v12 = vmul.f32 %v877_v54, %v849_v10 }
 0x797   :  { %1811 = vmatprep.mubr.f32.mxu0 %v881_v12 }
 0x798   :  { %1812 = vmatmul.mubr.f32.gmra.mrb[14].mxu0 %v882_v13 }
 0x863   :  { %v1810_v15 = vpop.f32.mrb[12].mxu0 }
 0x864   :  { %v959_v16 = vadd.f32 %v1810_v15, %v1530_v14  ;;  %v953_v17 = vpop.f32.mrb[13].mxu0 }
 0x865   :  { %v954_v18 = vadd.f32 %v1530_v14, %v953_v17  ;;  %v1531_v17 = vld [vmem:[%s2648_s4 + $0x6] ss:$0 sm:$0xff] }
 0x866   :  { %v2439_v19 = vadd.f32 %v959_v16, %v2375_v2 }
 0x867   :  { %v2442_v20 = vadd.f32 %v954_v18, %v2372_v1 }
 0x868   :  { %v979_v21 = vsel %vm228_vm4, %v2439_v19, 0.0  ;;  %v993_v23 = vmul.f32 %v2439_v19, %v2439_v19 }
 0x869   :  { %980 = vadd.xlane.f32.xlu0 %v979_v21  ;;  %v976_v22 = vsel %vm228_vm4, %v2442_v20, 0.0  ;;  %v992_v1 = vmul.f32 %v2442_v20, %v2442_v20 }
 0x86a   :  { %977 = vadd.xlane.f32.xlu1 %v976_v22  ;;  %v999_v2 = vsel %vm228_vm4, %v993_v23, 0.0 }
 0x86b   :  { %v1813_v24 = vpop.f32.mrb[14].mxu0  ;;  %v996_v31 = vsel %vm228_vm4, %v992_v1, 0.0 }
 0x86c   :  { %v969_v25 = vadd.f32 %v1813_v24, %v1530_v14  ;;  %v963_v26 = vpop.f32.mrb[15].mxu0  ;;  %v1532_v24 = vld [vmem:[%s2648_s4 + $0x7] ss:$0 sm:$0xff] }
 0x86d   :  { %v964_v27 = vadd.f32 %v1530_v14, %v963_v26 }
 0x86e   :  { %v2454_v28 = vadd.f32 %v969_v25, %v2384_v52  ;;  %1000 = vadd.xlane.f32.xlu1 %v999_v2 }
 0x86f   :  { %v2457_v29 = vadd.f32 %v964_v27, %v2382_v9 }
 0x870   :  { %v985_v30 = vsel %vm228_vm4, %v2454_v28, 0.0  ;;  %v995_v33 = vmul.f32 %v2454_v28, %v2454_v28 }
 0x871   :  { %986 = vadd.xlane.f32.xlu0 %v985_v30  ;;  %v982_v34 = vsel %vm228_vm4, %v2457_v29, 0.0  ;;  %v994_v52 = vmul.f32 %v2457_v29, %v2457_v29 }
 0x872   :  { %997 = vadd.xlane.f32.xlu1 %v996_v31  ;;  %v1005_v9 = vsel %vm228_vm4, %v995_v33, 0.0  ;;  %v2507_v33 = vshrl.u32 %v117_v32, 7 }
 0x873   :  { %v1002_v35 = vsel %vm228_vm4, %v994_v52, 0.0  ;;  %v33_v52 = vld [vmem:[%s2646_s2 + $0x60] sm:$0xff] }
 0x874   :  { %vm1058_vm6 = vcmp.lt.s32.totalorder %v2507_v33, 1  ;;  %vm1071_vm7 = vcmp.lt.s32.totalorder %v2507_v33, 7  ;;  %v50_v33 = vld [vmem:[%s2646_s2 + $0xe8] sm:$0xff] }
 0x875   :  { %983 = vadd.xlane.f32.xlu0 %v982_v34 }
 0x876   :  { %1006 = vadd.xlane.f32.xlu1 %v1005_v9  ;;  %v34_v9 = vld [vmem:[%s2646_s2 + $0x68] sm:$0xff] }
 0x877   :  { %v2015_v37 = vpack.c.bf16 %v34_v9, %v33_v52  ;;  %v51_v52 = vld [vmem:[%s2646_s2 + $0xf0] sm:$0xff]  ;;  %v52_v9 = vld [vmem:[%s2646_s2 + $0xf8] sm:$0xff] }
 0x879   :  { %1003 = vadd.xlane.f32.xlu0 %v1002_v35 }
 0x8f6   :  { %v981_v46 = vpop.xlane.xlu0 %980 }
 0x8f7   :  { %v978_v48 = vpop.xlane.xlu1 %977  ;;  %v989_v49 = vmul.f32 0.03125, %v981_v46 }
 0x8f8   :  { %v988_v53 = vmul.f32 0.03125, %v978_v48 }
 0x8f9   :  { %v1013_v51 = vmul.f32 %v989_v49, %v989_v49  ;;  %v1021_v14 = vsub.f32 %v2439_v19, %v989_v49  ;;  %v27_v19 = vld [vmem:[%s2646_s2 + $0x30] sm:$0xff] }
 0x8fa   :  { %v1012_v59 = vmul.f32 %v988_v53, %v988_v53  ;;  %v1020_v16 = vsub.f32 %v2442_v20, %v988_v53  ;;  %v28_v20 = vld [vmem:[%s2646_s2 + $0x38] sm:$0xff]  ;;  %v99_v49 = vld [vmem:[%s2647_s3 + $0x170] sm:$0xff] }
 0x8fb   :  { %v1001_v50 = vpop.xlane.xlu1 %1000  ;;  %v2011_v30 = vpack.c.bf16 %v28_v20, %v27_v19  ;;  %v44_v19 = vld [vmem:[%s2646_s2 + $0xb8] sm:$0xff] }
 0x8fc   :  { %v1009_v55 = vmul.f32 0.03125, %v1001_v50  ;;  %v35_v50 = vld [vmem:[%s2646_s2 + $0x70] sm:$0xff] }
 0x8fe   :  { %v1017_v56 = vsub.f32 %v1009_v55, %v1013_v51  ;;  %v987_v57 = vpop.xlane.xlu0 %986  ;;  %v36_v51 = vld [vmem:[%s2646_s2 + $0x78] sm:$0xff] }
 0x8ff   :  { %v998_v58 = vpop.xlane.xlu1 %997  ;;  %v991_v63 = vmul.f32 0.03125, %v987_v57 }
 0x900   :  { %v1025_v61 = vadd.f32 1e-05, %v1017_v56  ;;  %v1008_v0 = vmul.f32 0.03125, %v998_v58  ;;  %v2019_v58 = vpack.c.bf16 %v36_v51, %v35_v50 }
 0x901   :  { %v1015_v4 = vmul.f32 %v991_v63, %v991_v63  ;;  %v1023_v23 = vsub.f32 %v2454_v28, %v991_v63  ;;  %v100_v63 = vld [vmem:[%s2647_s3 + $0x178] sm:$0xff] }
 0x902   :  { %2095 = vrsqrt.f32 %v1025_v61  ;;  %v1016_v60 = vsub.f32 %v1008_v0, %v1012_v59  ;;  %v984_v62 = vpop.xlane.xlu0 %983 }
 0x903   :  { %v990_v45 = vmul.f32 0.03125, %v984_v62  ;;  %v1007_v3 = vpop.xlane.xlu1 %1006 }
 0x904   :  { %v1024_v5 = vadd.f32 1e-05, %v1016_v60  ;;  %v1011_v7 = vmul.f32 0.03125, %v1007_v3  ;;  %v101_v60 = vld [vmem:[%s2647_s3 + $0x180] sm:$0xff] }
 0x905   :  { %v1014_v6 = vmul.f32 %v990_v45, %v990_v45  ;;  %v1022_v1 = vsub.f32 %v2457_v29, %v990_v45 }
 0x906   :  { %2097 = vrsqrt.f32 %v1024_v5  ;;  %v1019_v8 = vsub.f32 %v1011_v7, %v1015_v4  ;;  %v1004_v47 = vpop.xlane.xlu0 %1003  ;;  %v37_v4 = vld [vmem:[%s2646_s2 + $0x80] sm:$0xff]  ;;  %v38_v5 = vld [vmem:[%s2646_s2 + $0x88] sm:$0xff] }
 0x907   :  { %v1010_v10 = vmul.f32 0.03125, %v1004_v47  ;;  %v102_v47 = vld [vmem:[%s2647_s3 + $0x188] sm:$0xff] }
 0x908   :  { %v1027_v54 = vadd.f32 1e-05, %v1019_v8 }
 0x909   :  { %v1018_v11 = vsub.f32 %v1010_v10, %v1014_v6  ;;  %v103_v6 = vld [vmem:[%s2647_s3 + $0x190] sm:$0xff] }
 0x90a   :  { %2099 = vrsqrt.f32 %v1027_v54  ;;  %v2024_v54 = vpack.c.bf16 %v38_v5, %v37_v4  ;;  %v1546_v4 = vld [vmem:[%s2648_s4 + $0x2] ss:$0 sm:$0xff] }
 0x90b   :  { %v1026_v12 = vadd.f32 1e-05, %v1018_v11 }
 0x90c   :  { %v2096_v13 = vpop.eup %2095 }
 0x90d   :  { %2101 = vrsqrt.f32 %v1026_v12  ;;  %v1033_v15 = vmul.f32 %v2096_v13, %v1021_v14  ;;  %v2129_v12 = vmov 0.0|0.0   ;;  %v39_v13 = vld [vmem:[%s2646_s2 + $0x90] sm:$0xff]  ;;  %v40_v14 = vld [vmem:[%s2646_s2 + $0x98] sm:$0xff] }
 0x90f   :  { %v1041_v22 = vmul.f32 %v1531_v17, %v1033_v15 }
 0x910   :  { %v2098_v18 = vpop.eup %2097 }
 0x911   :  { %v1032_v21 = vmul.f32 %v2098_v18, %v1020_v16  ;;  %v1049_v28 = vadd.f32 %v1532_v24, %v1041_v22  ;;  %v104_v16 = vld [vmem:[%s2647_s3 + $0x198] sm:$0xff]  ;;  %v2027_v18 = vpack.c.bf16 %v40_v14, %v39_v13  ;;  %v41_v22 = vld [vmem:[%s2646_s2 + $0xa0] sm:$0xff] }
 0x913   :  { %v1040_v25 = vmul.f32 %v1531_v17, %v1032_v21  ;;  %v1053_v40 = vrot.slane %v1049_v28, 7  ;;  %v1068_v59 = vrot.slane %v1049_v28, 1 }
 0x914   :  { %v2100_v26 = vpop.eup %2099 }
 0x915   :  { %v2503_v27 = vadd.f32 %v1532_v24, %v1040_v25  ;;  %v1035_v2 = vmul.f32 %v2100_v26, %v1023_v23  ;;  %v42_v23 = vld [vmem:[%s2646_s2 + $0xa8] sm:$0xff]  ;;  %v43_v25 = vld [vmem:[%s2646_s2 + $0xb0] sm:$0xff]  ;;  %v45_v26 = vld [vmem:[%s2646_s2 + $0xc0] sm:$0xff] }
 0x916   :  { %v2033_v20 = vpack.c.bf16 %v44_v19, %v43_v25 }
 0x917   :  { %v2102_v31 = vpop.eup %2101  ;;  %1822 = vmatprep.mubr.msk.f32.mxu1 %vm228_vm4, %v2503_v27  ;;  %v1043_v34 = vmul.f32 %v1531_v17, %v1035_v2  ;;  %v1052_v32 = vrot.slane %v2503_v27, 7  ;;  %v1067_v53 = vrot.slane %v2503_v27, 1  ;;  %v46_v27 = vld [vmem:[%s2646_s2 + $0xc8] sm:$0xff] }
 0x918   :  { %1823 = vmatmul.mubr.msk.f32.vlgmr.msra.gmra.mrb[12].mxu1 %vm228_vm4, %v1049_v28  ;;  %v1034_v29 = vmul.f32 %v2102_v31, %v1022_v1  ;;  %v2036_v2 = vpack.c.bf16 %v46_v27, %v45_v26  ;;  %v47_v1 = vld [vmem:[%s2646_s2 + $0xd0] sm:$0xff]  ;;  %v48_v28 = vld [vmem:[%s2646_s2 + $0xd8] sm:$0xff]  ;;  %v49_v31 = vld [vmem:[%s2646_s2 + $0xe0] sm:$0xff] }
 0x919   :  { %2010 = vmatpush3.bf16.msra.mxu1 %v2007_v44  ;;  %v1051_v35 = vadd.f32 %v1532_v24, %v1043_v34  ;;  %v1061_v46 = vsel %vm1058_vm6, %v1052_v32, %v1053_v40  ;;  %v1074_v62 = vsel %vm1071_vm7, %v1067_v53, %v1068_v59  ;;  %v2042_v34 = vpack.c.bf16 %v50_v33, %v49_v31 }
 0x91a   :  { %v1042_v36 = vmul.f32 %v1531_v17, %v1034_v29  ;;  %2012 = vmatprep.subr.bf16.mxu1 %v2011_v30  ;;  %v1064_v56 = vmul.f32 %v1061_v46, %v98_v43  ;;  %v1076_v8 = vmul.f32 %v1074_v62, %v101_v60  ;;  %v2045_v29 = vpack.c.bf16 %v52_v9, %v51_v52 }
 0x91b   :  { %v1055_v38 = vrot.slane %v1051_v35, 7  ;;  %v1070_v45 = vrot.slane %v1051_v35, 1 }
 0x91c   :  { %v1050_v41 = vadd.f32 %v1532_v24, %v1042_v36  ;;  %v2030_v24 = vpack.c.bf16 %v42_v23, %v41_v22 }
 0x91d   :  { %2014 = vmatpush3.bf16.msra.mxu1 %v2011_v30  ;;  %v1062_v42 = vsel %vm1058_vm6, %v1055_v38, %v1052_v32  ;;  %v1075_v17 = vsel %vm1071_vm7, %v1070_v45, %v1067_v53  ;;  %v2039_v30 = vpack.c.bf16 %v48_v28, %v47_v1  ;;  %v1545_v32 = vld [vmem:[%s2648_s4 + $0x1] ss:$0 sm:$0xff] }
 0x91e   :  { %v1054_v44 = vrot.slane %v1050_v41, 7  ;;  %1825 = vmatprep.mubr.msk.f32.mxu1 %vm228_vm4, %v1050_v41  ;;  %v1063_v48 = vmul.f32 %v1062_v42, %v97_v39  ;;  %2016 = vmatprep.subr.bf16.mxu1 %v2015_v37  ;;  %v1069_v61 = vrot.slane %v1050_v41, 1  ;;  %v1079_v21 = vmul.f32 %v1075_v17, %v104_v16 }
 0x91f   :  { %1826 = vmatmul.mubr.msk.f32.gmra.mrb[14].mxu1 %vm228_vm4, %v1051_v35  ;;  %v2131_v35 = vmov 0.0  }
 0x920   :  { %1836 = vmatprep.mubr.msk.f32.mxu1 %vm228_vm4, %v1063_v48  ;;  %v1060_v55 = vsel %vm1058_vm6, %v1053_v40, %v1054_v44  ;;  %v1059_v0 = vsel %vm1058_vm6, %v1054_v44, %v1055_v38  ;;  %v1073_v7 = vsel %vm1071_vm7, %v1068_v59, %v1069_v61  ;;  %v1072_v10 = vsel %vm1071_vm7, %v1069_v61, %v1070_v45 }
 0x921   :  { %v1065_v57 = vmul.f32 %v1060_v55, %v99_v49  ;;  %v1066_v3 = vmul.f32 %v1059_v0, %v100_v63  ;;  %v1077_v11 = vmul.f32 %v1073_v7, %v102_v47  ;;  %v1078_v15 = vmul.f32 %v1072_v10, %v103_v6 }
 0x923   :  { %1837 = vmatmul.mubr.msk.f32.vlgmr.msra.gmra.mrb[12].mxu1 %vm228_vm4, %v1064_v56 }
 0x924   :  { %2018 = vmatpush3.bf16.msra.mxu1 %v2015_v37  ;;  %1839 = vmatprep.mubr.msk.f32.mxu1 %vm228_vm4, %v1065_v57 }
 0x925   :  { %2020 = vmatprep.subr.bf16.mxu1 %v2019_v58 }
 0x927   :  { %1840 = vmatmul.mubr.msk.f32.gmra.mrb[14].mxu1 %vm228_vm4, %v1066_v3 }
 0x928   :  { %2022 = vmatpush3.bf16.msra.mxu1 %v2019_v58  ;;  %1850 = vmatprep.mubr.msk.f32.mxu1 %vm228_vm4, %v1076_v8 }
 0x929   :  { %2023 = vmatprep.subr.bf16.mxu1 %v2129_v12 }
 0x92b   :  { %1851 = vmatmul.mubr.msk.f32.vlgmr.msra.gmra.mrb[12].mxu1 %vm228_vm4, %v1077_v11 }
 0x92c   :  { %1853 = vmatprep.mubr.msk.f32.mxu1 %vm228_vm4, %v1078_v15  ;;  %2025 = vmatpush3.bf16.msra.mxu1 %v2024_v54 }
 0x92d   :  { %2026 = vmatprep.subr.bf16.mxu1 %v2129_v12 }
 0x92f   :  { %1854 = vmatmul.mubr.msk.f32.gmra.mrb[14].mxu1 %vm228_vm4, %v1079_v21 }
 0x930   :  { %2028 = vmatpush3.bf16.msra.mxu1 %v2027_v18  ;;  %1888 = vmatprep.mubr.msk.f32.mxu1 %vm2130_vm8, %v2131_v35 }
 0x931   :  { %2029 = vmatprep.subr.bf16.mxu1 %v2129_v12 }
 0x934   :  { %2031 = vmatpush3.bf16.msra.mxu1 %v2030_v24 }
 0x935   :  { %2032 = vmatprep.subr.bf16.mxu1 %v2129_v12 }
 0x938   :  { %2034 = vmatpush3.bf16.msra.mxu1 %v2033_v20 }
 0x939   :  { %2035 = vmatprep.subr.bf16.mxu1 %v2129_v12 }
 0x93c   :  { %2037 = vmatpush3.bf16.msra.mxu1 %v2036_v2 }
 0x93d   :  { %2038 = vmatprep.subr.bf16.mxu1 %v2129_v12 }
 0x940   :  { %2040 = vmatpush3.bf16.msra.mxu1 %v2039_v30 }
 0x941   :  { %2041 = vmatprep.subr.bf16.mxu1 %v2129_v12 }
 0x944   :  { %2043 = vmatpush3.bf16.msra.mxu1 %v2042_v34 }
 0x945   :  { %2044 = vmatprep.subr.bf16.mxu1 %v2129_v12 }
 0x948   :  { %2046 = vmatpush3.bf16.msra.mxu1 %v2045_v29 }
 0x9fe   :  { %v1852_v36 = vpop.f32.mrb[12].mxu1 }
 0x9ff   :  { %v1380_v37 = vadd.f32 %v1852_v36, %v1545_v32  ;;  %v1352_v38 = vpop.f32.mrb[13].mxu1 }
 0xa00   :  { %v1379_v39 = vadd.f32 %v1545_v32, %v1352_v38 }
 0xa01   :  { %v1384_v40 = vmax.f32 %v1380_v37, 0.0 }
 0xa02   :  { %v1383_v41 = vmax.f32 %v1379_v39, 0.0  ;;  %v1855_v42 = vpop.f32.mrb[14].mxu1 }
 0xa03   :  { %v1382_v43 = vadd.f32 %v1855_v42, %v1545_v32  ;;  %v1362_v44 = vpop.f32.mrb[15].mxu1 }
 0xa04   :  { %v1387_v46 = vmax.f32 %v1383_v41, %v1384_v40  ;;  %v1381_v48 = vadd.f32 %v1545_v32, %v1362_v44 }
 0xa05   :  { %v1386_v49 = vmax.f32 %v1382_v43, 0.0 }
 0xa06   :  { %v1388_v50 = vrot.slane %v1387_v46, 4  ;;  %v1385_v51 = vmax.f32 %v1381_v48, 0.0 }
 0xa08   :  { %v1389_v53 = vmax.f32 %v1387_v46, %v1388_v50  ;;  %v1394_v55 = vmax.f32 %v1385_v51, %v1386_v49 }
 0xa0a   :  { %v1390_v56 = vrot.slane %v1389_v53, 2  ;;  %v1395_v57 = vrot.slane %v1394_v55, 4 }
 0xa0c   :  { %v1391_v58 = vmax.f32 %v1389_v53, %v1390_v56  ;;  %v1396_v59 = vmax.f32 %v1394_v55, %v1395_v57 }
 0xa0e   :  { %v1397_v61 = vrot.slane %v1396_v59, 2  ;;  %v1392_v63 = vrot.slane %v1391_v58, 1 }
 0xa10   :  { %v1398_v0 = vmax.f32 %v1396_v59, %v1397_v61  ;;  %v1393_v62 = vmax.f32 %v1391_v58, %v1392_v63 }
 0xa12   :  { %v1399_v60 = vrot.slane %v1398_v0, 1 }
 0xa14   :  { %v1400_v45 = vmax.f32 %v1398_v0, %v1399_v60 }
 0xa16   :  { %v1408_v3 = vsel %vm1407_vm9, %v1400_v45, %v1393_v62 }
 0xa17   :  { %1889 = vmatmul.mubr.f32.vlgmr.msra.gmra.mrb[16].mxu1 %v1408_v3 }
 0xaea   :  { %v1476_v5 = vpop.f32.mrb[16].mxu1 }
 0xaeb   :  { %v1477_v7 = vadd.f32 %v1546_v4, %v1476_v5  ;;  %v1890_v8 = vpop.f32.mrb[17].mxu1 }
 0xaed   :  { %1480 = vst [vmem:[#allocation2] sm:$0x3] %v1477_v7 }
 0xaee   :  { %2114 = shalt.err (!%p2111_p4)
}
 0xaef   :  { %s2115_s7 = scalar_lea.hbm %s2649_s5, 32 }
 0xaf0   :  { %p2116_p5 = scmp.ne.s32.totalorder %s2649_s5, %s2115_s7  ;;  %p2119_p6 = scmp.lt.u32.totalorder %s2115_s7, %s2649_s5 }
 0xaf2   :  { %p2121_p7 = pnand %p2119_p6, %p2116_p5 }
 0xaf4   :  { %2124 = shalt.err (!%p2121_p7)
}
 0xaf5   :  { %1490 = dma.vmem_to_hbm [thread:$0]  %s1488_s1, 32, %s2649_s5, [#allocation3]  }
 0xaf6   :  { %2125 = dma.done.wait [#allocation3], 32  }
 0xaf7   :  { %2126 = vsyncadd [#allocation3], 4294967264 }
 0xaf8   :  { %1494 = vsyncpa [#allocation3], 1 }

</bundles_post_ra>
